<compile_context>
chip_gen: v5e
topology: v5e:2x2
jax: 0.10.0
libtpu: 0.0.40
codegen_flags: <defaults>
</compile_context>

<pallas_src>
import jax
import jax.numpy as jnp
from jax.experimental import pallas as pl
from jax.experimental.pallas import tpu as pltpu


def pro_kernel(x_ref, w1_ref, b1_ref, w2a_ref, w2b_ref, b2_ref, o_ref):
    """One batch tile of the PRO_network forward pass.

    Shapes (batch on the 128-lane axis):
      x_ref   : (2, ninput, TB)   the two input halves, stacked on a leading axis
      w1_ref  : (hidden, ninput)  shared first-layer weight
      b1_ref  : (hidden, 1)       first-layer bias (broadcasts over lanes)
      w2a_ref : (1, hidden)       output weight, first-half columns
      w2b_ref : (1, hidden)       output weight, second-half columns
      b2_ref  : (1, 1)  SMEM      output bias scalar
      o_ref   : (1, TB)           lane-dense output row
    """
    w1 = w1_ref[...]
    b1 = b1_ref[...]

    # Shared-weight first layer applied to both halves (leading-axis indexing
    # of x_ref is pure addressing — no cross-lane data movement).
    h1 = jnp.maximum(
        jnp.dot(w1, x_ref[0], preferred_element_type=jnp.float32) + b1, 0.0)
    h2 = jnp.maximum(
        jnp.dot(w1, x_ref[1], preferred_element_type=jnp.float32) + b1, 0.0)

    # Output layer without the lane-axis concat: split W2 into its two halves
    # and accumulate.  Result is already a lane-dense (1, TB) row.
    o_ref[...] = (
        jnp.dot(w2a_ref[...], h1, preferred_element_type=jnp.float32)
        + jnp.dot(w2b_ref[...], h2, preferred_element_type=jnp.float32)
        + b2_ref[0, 0]
    )


def pro_network_forward(x, w1, b1, w2, b2, *, block_b=1024):
    """PRO_network forward.  x: (B, 2*ninput) float32 -> (B,) float32."""
    B, two_nin = x.shape
    ninput = two_nin // 2
    hidden = w1.shape[0]

    # Batch tile on the lane axis (multiple of 128).  Tiny VMEM footprint at
    # these feature sizes; re-derive block_b only if features grow (v7x has
    # 64 MiB VMEM vs 128 MiB on v5e/v6e).
    TB = min(block_b, ((B + 127) // 128) * 128)
    Bp = ((B + TB - 1) // TB) * TB
    grid = (Bp // TB,)

    xp = x if Bp == B else jnp.pad(x, ((0, Bp - B), (0, 0)))
    # Layout plumbing in the wrapper: halves on a leading axis, batch on lanes.
    xt = xp.reshape(Bp, 2, ninput).transpose(1, 2, 0)      # (2, ninput, Bp)

    w1f = w1.astype(jnp.float32)                            # (hidden, ninput)
    b1c = b1.reshape(hidden, 1).astype(jnp.float32)         # (hidden, 1)
    w2a = w2[:, :hidden].astype(jnp.float32)                # (1, hidden)
    w2b = w2[:, hidden:].astype(jnp.float32)                # (1, hidden)
    b2s = b2.reshape(1, 1).astype(jnp.float32)              # (1, 1) scalar

    def full_block(shape):
        return pl.BlockSpec(shape, lambda i, _s=shape: tuple(0 for _ in _s))

    out = pl.pallas_call(
        pro_kernel,
        out_shape=jax.ShapeDtypeStruct((1, Bp), jnp.float32),
        grid=grid,
        in_specs=[
            pl.BlockSpec((2, ninput, TB), lambda i: (0, 0, i)),   # x tiles
            full_block((hidden, ninput)),                          # w1 (resident)
            full_block((hidden, 1)),                               # b1
            full_block((1, hidden)),                               # w2a
            full_block((1, hidden)),                               # w2b
            pl.BlockSpec(memory_space=pltpu.MemorySpace.SMEM),     # b2 scalar
        ],
        out_specs=pl.BlockSpec((1, TB), lambda i: (0, i)),
        compiler_params=pltpu.CompilerParams(
            dimension_semantics=("parallel",)),
    )(xt, w1f, b1c, w2a, w2b, b2s)

    return out.reshape(Bp)[:B]


def reference_forward(x, w1, b1, w2, b2):
    """Pure-JAX reference matching the PyTorch module exactly."""
    ninput = x.shape[1] // 2
    x1 = x[:, :ninput]
    x2 = x[:, ninput:]
    h1 = jnp.maximum(x1 @ w1.T + b1, 0.0)
    h2 = jnp.maximum(x2 @ w1.T + b1, 0.0)
    h = jnp.concatenate([h1, h2], axis=1)
    return (h @ w2.T + b2).squeeze(-1)


if __name__ == "__main__":
    ninput = 16   # features per half (module input width = 2*ninput)
    hidden = 20   # fixed in PRO_network.__init__
    B = 300       # exercises both the batch grid and the padding path

    key = jax.random.PRNGKey(0)
    kx, kw1, kb1, kw2, kb2 = jax.random.split(key, 5)

    x = jax.random.normal(kx, (B, 2 * ninput), dtype=jnp.float32)
    # Deterministic synthetic parameters (PyTorch orientation).
    w1 = jax.random.normal(kw1, (hidden, ninput), dtype=jnp.float32) * 0.1
    b1 = jax.random.normal(kb1, (hidden,), dtype=jnp.float32) * 0.1
    w2 = jax.random.normal(kw2, (1, 2 * hidden), dtype=jnp.float32) * 0.1
    b2 = jax.random.normal(kb2, (1,), dtype=jnp.float32) * 0.1

    out = pro_network_forward(x, w1, b1, w2, b2, block_b=128)
    out = jax.block_until_ready(out)

    ref = reference_forward(x, w1, b1, w2, b2)
    assert out.shape == (B,), out.shape
    assert jnp.allclose(out, ref, atol=1e-5, rtol=1e-5), (out, ref)

    print("KERNEL_OK")
</pallas_src>

<mosaic_0001>
module attributes {stable_mosaic.version = 11 : i64} {
  func.func @pro_kernel(%arg0: i32, %arg1: memref<2x16x128xf32, #tpu.memory_space<vmem>>, %arg2: memref<20x16xf32, #tpu.memory_space<vmem>>, %arg3: memref<20x1xf32, #tpu.memory_space<vmem>>, %arg4: memref<1x20xf32, #tpu.memory_space<vmem>>, %arg5: memref<1x20xf32, #tpu.memory_space<vmem>>, %arg6: memref<1x1xf32, #tpu.memory_space<smem>>, %arg7: memref<1x128xf32, #tpu.memory_space<vmem>>) attributes {dimension_semantics = [#tpu.dimension_semantics<parallel>], iteration_bounds = array<i64: 3>, scalar_prefetch = 0 : i64, scratch_operands = 0 : i64, tpu.core_type = #tpu.core_type<tc>, window_params = [{transform_indices = @transform_0, window_bounds = array<i64: 2, 16, 128>}, {pipeline_mode = #tpu.pipeline_mode<synchronous>, transform_indices = @transform_1, window_bounds = array<i64: 20, 16>}, {pipeline_mode = #tpu.pipeline_mode<synchronous>, transform_indices = @transform_2, window_bounds = array<i64: 20, 1>}, {pipeline_mode = #tpu.pipeline_mode<synchronous>, transform_indices = @transform_3, window_bounds = array<i64: 1, 20>}, {pipeline_mode = #tpu.pipeline_mode<synchronous>, transform_indices = @transform_4, window_bounds = array<i64: 1, 20>}, {transform_indices = @transform_5, window_bounds = array<i64: 1, 1>}, {transform_indices = @transform_6, window_bounds = array<i64: 1, 128>}]} {
    %c0 = arith.constant 0 : index
    %c0_0 = arith.constant 0 : index
    %0 = vector.load %arg2[%c0, %c0_0] : memref<20x16xf32, #tpu.memory_space<vmem>>, vector<20x16xf32>
    %c0_1 = arith.constant 0 : index
    %c0_2 = arith.constant 0 : index
    %1 = vector.load %arg3[%c0_1, %c0_2] : memref<20x1xf32, #tpu.memory_space<vmem>>, vector<20x1xf32>
    %c0_3 = arith.constant 0 : index
    %c0_4 = arith.constant 0 : index
    %c0_5 = arith.constant 0 : index
    %2 = vector.load %arg1[%c0_3, %c0_4, %c0_5] : memref<2x16x128xf32, #tpu.memory_space<vmem>>, vector<1x16x128xf32>
    %3 = vector.shape_cast %2 : vector<1x16x128xf32> to vector<16x128xf32>
    %cst = arith.constant dense<0.000000e+00> : vector<20x128xf32>
    %4 = tpu.matmul %0, %3, %cst {dimension_numbers = #tpu.dot_dimension_numbers<[1], [0], [0], [1], [0, 0, 1, 1], [], []>} : vector<20x16xf32>, vector<16x128xf32>, vector<20x128xf32> -> vector<20x128xf32>
    %5 = vector.broadcast %1 : vector<20x1xf32> to vector<20x128xf32>
    %6 = arith.addf %4, %5 : vector<20x128xf32>
    %cst_6 = arith.constant 0.000000e+00 : f32
    %7 = vector.broadcast %cst_6 : f32 to vector<20x128xf32>
    %8 = arith.maximumf %6, %7 : vector<20x128xf32>
    %c1 = arith.constant 1 : index
    %c0_7 = arith.constant 0 : index
    %c0_8 = arith.constant 0 : index
    %9 = vector.load %arg1[%c1, %c0_7, %c0_8] : memref<2x16x128xf32, #tpu.memory_space<vmem>>, vector<1x16x128xf32>
    %10 = vector.shape_cast %9 : vector<1x16x128xf32> to vector<16x128xf32>
    %cst_9 = arith.constant dense<0.000000e+00> : vector<20x128xf32>
    %11 = tpu.matmul %0, %10, %cst_9 {dimension_numbers = #tpu.dot_dimension_numbers<[1], [0], [0], [1], [0, 0, 1, 1], [], []>} : vector<20x16xf32>, vector<16x128xf32>, vector<20x128xf32> -> vector<20x128xf32>
    %12 = vector.broadcast %1 : vector<20x1xf32> to vector<20x128xf32>
    %13 = arith.addf %11, %12 : vector<20x128xf32>
    %cst_10 = arith.constant 0.000000e+00 : f32
    %14 = vector.broadcast %cst_10 : f32 to vector<20x128xf32>
    %15 = arith.maximumf %13, %14 : vector<20x128xf32>
    %c0_11 = arith.constant 0 : index
    %c0_12 = arith.constant 0 : index
    %16 = vector.load %arg4[%c0_11, %c0_12] : memref<1x20xf32, #tpu.memory_space<vmem>>, vector<1x20xf32>
    %cst_13 = arith.constant dense<0.000000e+00> : vector<1x128xf32>
    %17 = tpu.matmul %16, %8, %cst_13 {dimension_numbers = #tpu.dot_dimension_numbers<[1], [0], [0], [1], [0, 0, 1, 1], [], []>} : vector<1x20xf32>, vector<20x128xf32>, vector<1x128xf32> -> vector<1x128xf32>
    %c0_14 = arith.constant 0 : index
    %c0_15 = arith.constant 0 : index
    %18 = vector.load %arg5[%c0_14, %c0_15] : memref<1x20xf32, #tpu.memory_space<vmem>>, vector<1x20xf32>
    %cst_16 = arith.constant dense<0.000000e+00> : vector<1x128xf32>
    %19 = tpu.matmul %18, %15, %cst_16 {dimension_numbers = #tpu.dot_dimension_numbers<[1], [0], [0], [1], [0, 0, 1, 1], [], []>} : vector<1x20xf32>, vector<20x128xf32>, vector<1x128xf32> -> vector<1x128xf32>
    %20 = arith.addf %17, %19 : vector<1x128xf32>
    %c0_17 = arith.constant 0 : index
    %c0_18 = arith.constant 0 : index
    %21 = memref.load %arg6[%c0_17, %c0_18] : memref<1x1xf32, #tpu.memory_space<smem>>
    %22 = vector.broadcast %21 : f32 to vector<1x128xf32>
    %23 = arith.addf %20, %22 : vector<1x128xf32>
    %c0_19 = arith.constant 0 : index
    %c0_20 = arith.constant 0 : index
    %24 = vector.load %arg7[%c0_19, %c0_20] : memref<1x128xf32, #tpu.memory_space<vmem>>, vector<1x128xf32>
    tpu.vector_store %arg7[%c0_19, %c0_20], %23 {strides = array<i32>} : memref<1x128xf32, #tpu.memory_space<vmem>>, vector<1x128xf32>,
    return
  }
  func.func @transform_0(%arg0: i32) -> (i32, i32, i32) {
    %c0_i32 = arith.constant 0 : i32
    %c0_i32_0 = arith.constant 0 : i32
    %c0_i32_1 = arith.constant 0 : i32
    return %c0_i32, %c0_i32_0, %arg0 : i32, i32, i32
  }
  func.func @transform_1(%arg0: i32) -> (i32, i32) {
    %c0_i32 = arith.constant 0 : i32
    %c0_i32_0 = arith.constant 0 : i32
    %c0_i32_1 = arith.constant 0 : i32
    return %c0_i32, %c0_i32_0 : i32, i32
  }
  func.func @transform_2(%arg0: i32) -> (i32, i32) {
    %c0_i32 = arith.constant 0 : i32
    %c0_i32_0 = arith.constant 0 : i32
    %c0_i32_1 = arith.constant 0 : i32
    return %c0_i32, %c0_i32_0 : i32, i32
  }
  func.func @transform_3(%arg0: i32) -> (i32, i32) {
    %c0_i32 = arith.constant 0 : i32
    %c0_i32_0 = arith.constant 0 : i32
    %c0_i32_1 = arith.constant 0 : i32
    return %c0_i32, %c0_i32_0 : i32, i32
  }
  func.func @transform_4(%arg0: i32) -> (i32, i32) {
    %c0_i32 = arith.constant 0 : i32
    %c0_i32_0 = arith.constant 0 : i32
    %c0_i32_1 = arith.constant 0 : i32
    return %c0_i32, %c0_i32_0 : i32, i32
  }
  func.func @transform_5(%arg0: i32) -> (i32, i32) {
    %c0_i32 = arith.constant 0 : i32
    %c0_i32_0 = arith.constant 0 : i32
    %c0_i32_1 = arith.constant 0 : i32
    return %c0_i32, %c0_i32_0 : i32, i32
  }
  func.func @transform_6(%arg0: i32) -> (i32, i32) {
    %c0_i32 = arith.constant 0 : i32
    %c0_i32_0 = arith.constant 0 : i32
    return %c0_i32, %arg0 : i32, i32
  }
}

</mosaic_0001>

<bundles_post_ra>
// kernel: tpu_custom_call.1
= control target key start
LH: loop header
LB: loop body
LE: loop exit
PB: predicated region body
PF: predicated region fallthrough
CT: control target
= control target key end

     0   :  { %s875_s0 = inlined_call_operand.hbm [shape: f32[2,16,384], index: 0, kind: input, shape index: {}]   ;;  %s876_s1 = inlined_call_operand.vmem [shape: f32[20,16], index: 1, kind: input, shape index: {}]   ;;  %s877_s2 = inlined_call_operand.vmem [shape: f32[20,1], index: 2, kind: input, shape index: {}]   ;;  %s878_s3 = inlined_call_operand.vmem [shape: f32[1,20], index: 3, kind: input, shape index: {}]   ;;  %s879_s4 = inlined_call_operand.vmem [shape: f32[1,20], index: 4, kind: input, shape index: {}]   ;;  %s880_s5 = inlined_call_operand.<no memory space> [shape: f32[1,1], index: 5, kind: input, shape index: {}]   ;;  %s881_s6 = inlined_call_operand.hbm [shape: f32[1,384], index: 6, kind: output, shape index: {}]  }
   0x1   :  { %11 = sst [smem:[#allocation2]] %s880_s5 }
   0x2   :  { %12 = vsyncpa [#allocation4], 0 }
   0x3   :  { %14 = vsyncpa [#allocation4 + $0x1], 0 }
   0x4   :  { %15 = vsyncpa [#allocation5], 0 }
   0x5   :  { %17 = vsyncpa [#allocation5 + $0x1], 0  ;;  %s721_s23 = smov 0   ;;  %s723_s24 = smov 0  }
   0x6   :  { %s725_s25 = smov 0   ;;  %s727_s26 = smov 0  }
   0x7 LB: > { %s742_s5 = sadd.s32 4294967295, %s677_s26   ;;  %s504_s27 = sadd.s32 4294967294, %s677_s26   ;;  %s677_s26 = sphi %s727_s26, %s890_s26   ;;  %s673_s25 = sphi %s725_s25, %s889_s25   ;;  %s669_s24 = sphi %s723_s24, %s888_s24   ;;  %s665_s23 = sphi %s721_s23, %s887_s23  }
   0x8   : > { %s746_s28 = sadd.s32 1, %s677_s26   ;;  %s30_s29 = sadd.s32 1, %s673_s25 }
   0x9   : > { %s27_s30 = ssub.s32 %s677_s26, %s746_s28  ;;  %p37_p0 = scmp.ne.s32.totalorder %s673_s25, %s669_s24 }
   0xa   : > { %p28_p1 = scmp.eq.s32.totalorder %s27_s30, 0  ;;  %p38_p2 = scmp.eq.s32.totalorder %s677_s26, 0 }
   0xb   : > { %p43_p3 = scmp.ne.s32.totalorder %s669_s24, %s665_s23  ;;  %p44_p4 = scmp.eq.s32.totalorder %s742_s5, 0 }
   0xc   : > { %s758_s7 = scalar_select %p28_p1, %s673_s25, %s30_s29  }
   0xd   : > { %p760_p5 = por %p38_p2, %p37_p0  ;;  %p764_p6 = por %p44_p4, %p43_p3 }
   0xe   : > { %p172_p7 = scmp.eq.s32.totalorder %s742_s5, 2  ;;  %p178_p8 = scmp.eq.s32.totalorder %s504_s27, 2 }
   0xf   : > { %p541_p9 = scmp.lt.s32.totalorder %s677_s26, 3  ;;  %s213_s12 = sand.u32 1, %s673_s25  }
  0x10   : > { %p770_p10 = por %p172_p7, %p37_p0  ;;  %p774_p11 = por %p178_p8, %p43_p3 }
  0x11   : > { %s508_s13 = sshll.u32 %s677_s26, 3  ;;  %s507_s14 = sshll.u32 %s213_s12, 5 }
  0x12   : > { %s221_s17 = scalar_lea.hbm %s875_s0, %s508_s13  ;;  %s217_s19 = scalar_lea.vmem [#allocation3], %s507_s14 }
  0x13   : > { %s222_s18 = sshll.u32 %s221_s17, 4  ;;  %s224_s20 = sshll.u32 %s217_s19, 4  ;;  %s223_s18 = int_to_ptr.hbm [resolvable:$true] %s222_s18  ;;  %s225_s20 = int_to_ptr.vmem [resolvable:$true] %s224_s20 }
  0x14   : > { %p785_p12 = pnand %p541_p9, %p760_p5  ;;  %p509_p13 = scmp.ge.s32.totalorder %s677_s26, 1 }
  0x15   : > { %s214_s22 = scalar_lea.sflag [#allocation4], %s213_s12  ;;  %s581_s27 = sshra.s32 %s223_s18, 4  ;;  %s582_s27 = int_to_ptr.hbm [resolvable:$true] %s581_s27 }
  0x16   : > { %s583_s29 = scalar_lea.hbm %s582_s27, 32  ;;  %p585_p1 = pneg %p785_p12 }
  0x17   : > { %p584_p0 = scmp.ne.s32.totalorder %s582_s27, %s583_s29  ;;  %s588_s14 = scalar_lea.hbm %s875_s0, 96 }
  0x18   : > { %p589_p4 = scmp.lt.s32.totalorder %s582_s27, %s875_s0  ;;  %p590_p5 = scmp.lt.s32.totalorder %s588_s14, %s583_s29 }
  0x19   : > { %p586_p2 = pnand %p585_p1, %p584_p0 }
  0x1a   : > { %p591_p7 = por %p590_p5, %p589_p4 }
  0x1b   : > { %p587_p3 = pneg %p586_p2 }
  0x1d   : > { %p592_p8 = pnand %p591_p7, %p587_p3 }
  0x1f   : > { %595 = shalt.err (!%p592_p8)
}
  0x20   : > { %s679_s12 = smov 384   ;;  %s680_s16 = smov 128  }
  0x21   : > { %s681_s17 = smov 8   ;;  %p232_p9 = scmp.lt.s32.totalorder %s677_s26, 4 }
  0x22   : > { %536 = dma.hbm_to_vmem [thread:$0]  (!%p785_p12), %s223_s18, 512, %s225_s20, %s214_s22, %s679_s12, %s680_s16, %s681_s17  }
  0x23   : > { %p233_p0 = pnand %p509_p13, %p232_p9 }
  0x24   : > { %s804_s19 = sand.u32 (!%p233_p0), 1, %s669_s24  }
  0x25   : > { %236 = sbr.rel (%p233_p0) target bundleno = 330 (0x14a), region = 44  ;;  %s510_s27 = sshll.u32 (!%p233_p0), %s804_s19, 5 }
  0x26   : > { %s239_s29 = scalar_lea.sflag (!%p233_p0), [#allocation4], %s804_s19  ;;  %s242_s30 = scalar_lea.vmem (!%p233_p0), [#allocation3], %s510_s27 }
  0x2a   : > { %656 = dma.done.wait (%p764_p6), %s239_s29, 512  }
  0x2b   : > { %658 = vsyncadd (%p764_p6), %s239_s29, 4294966784  ;;  %v682_v0 = vmov 0   ;;  %v278_v1 = vld [vmem:[%s242_s30 + $0x8] sm:$0xff]  ;;  %v515_v2 = vld [vmem:[%s242_s30 + $0x18] sm:$0xff]  ;;  %vm294_vm0 = vcmask 130048   ;;  %vm371_vm1 = vcmask 1043456   ;;  %s434_s9 = scalar_lea.hbm %s881_s6, %s742_s5 }
  0x2c   : > { %579 = vset.pattern.permute.xlu0 %v682_v0  ;;  %580 = vset.pattern.permute.xlu1 %v682_v0  ;;  %v277_v3 = vld [vmem:[%s242_s30] sm:$0xff]  ;;  %v514_v4 = vld [vmem:[%s242_s30 + $0x10] sm:$0xff]  ;;  %v272_v9 = vld [vmem:[%s876_s1 + $0x8] sm:$0xff]  ;;  %vm367_vm2 = vcmask 162816   ;;  %s421_s20 = sld [smem:[#allocation2]]  ;;  %s270_s13 = scalar_lea.vmem [#allocation6], %s804_s19 }
  0x2d   : > { %318 = vmatpush.msra.mxu0 %v278_v1  ;;  %525 = vmatpush.msra.mxu2 %v278_v1  ;;  %v271_v5 = vld [vmem:[%s876_s1] sm:$0xff]  ;;  %v273_v6 = vld [vmem:[%s876_s1 + $0x10] sm:$0xf]  ;;  %v275_v10 = vld [vmem:[%s877_s2 + $0x8] sm:$0xff]  ;;  %s436_s14 = sshll.u32 %s270_s13, 4  ;;  %s438_s8 = sshll.u32 %s434_s9, 4  ;;  %s437_s14 = int_to_ptr.vmem [resolvable:$true] %s436_s14  ;;  %s439_s8 = int_to_ptr.hbm [resolvable:$true] %s438_s8 }
  0x2e   : > { %350 = vmatpush.msra.mxu1 %v515_v2  ;;  %527 = vmatpush.msra.mxu3 %v515_v2  ;;  %v276_v7 = vld [vmem:[%s877_s2 + $0x10] sm:$0xf]  ;;  %v274_v8 = vld [vmem:[%s877_s2] sm:$0xff]  ;;  %s426_s15 = scalar_lea.sflag [#allocation5], %s804_s19  ;;  %s625_s12 = sshra.s32 %s439_s8, 4  ;;  %s626_s12 = int_to_ptr.hbm [resolvable:$true] %s625_s12 }
  0x2f   : > { %319 = vmatpush.msra.mxu0 %v277_v3  ;;  %526 = vmatpush.msra.mxu2 %v277_v3  ;;  %v365_v31 = vld [vmem:[%s878_s3] sm:$0x1]  ;;  %s627_s16 = scalar_lea.hbm %s626_s12, 1  ;;  %s631_s27 = scalar_lea.hbm %s881_s6, 3 }
  0x30   : > { %351 = vmatpush.msra.mxu1 %v514_v4  ;;  %528 = vmatpush.msra.mxu3 %v514_v4  ;;  %v366_v33 = vld [vmem:[%s879_s4] sm:$0x1]  ;;  %p628_p6 = scmp.ne.s32.totalorder %s626_s12, %s627_s16  ;;  %p632_p1 = scmp.lt.s32.totalorder %s626_s12, %s881_s6 }
  0x31   : > { %511 = vmatmul.msk.f32.vlgmr.msra.gmra.mxu0 %vm294_vm0, %v271_v5  ;;  %513 = vmatmul.msk.f32.vlgmr.msra.gmra.mxu2 %vm294_vm0, %v273_v6  ;;  %p633_p2 = scmp.lt.s32.totalorder %s631_s27, %s627_s16 }
  0x32   : > { %516 = vmatmul.msk.f32.vlgmr.msra.gmra.mxu1 %vm294_vm0, %v271_v5  ;;  %518 = vmatmul.msk.f32.vlgmr.msra.gmra.mxu3 %vm294_vm0, %v273_v6  ;;  %v422_v36 = vstv %s421_s20  ;;  %p629_p12 = pnand %p628_p6, %p770_p10 }
  0x33   : > { %291 = vperm.xlu0 %579, %v276_v7   ;;  %281 = vperm.xlu1 %580, %v274_v8   ;;  %p634_p3 = por %p633_p2, %p632_p1 }
  0x34   : > { %p630_p13 = pneg %p629_p12 }
  0x36   : > { %p635_p4 = pnand %p634_p3, %p630_p13 }
  0x39   : > { %512 = vmatmul.msk.f32.gmra.mxu0 %vm294_vm0, %v272_v9 }
  0x3a   : > { %517 = vmatmul.msk.f32.gmra.mxu1 %vm294_vm0, %v272_v9 }
  0x3b   : > { %286 = vperm.xlu0 %579, %v275_v10  }
  0xa5   : > { %v292_v11 = vpop.permute.xlu0 %291  ;;  %v282_v14 = vpop.permute.xlu1 %281 }
  0xad   : > { %v287_v18 = vpop.permute.xlu0 %286 }
  0xae   : > { %v321_v12 = vpop.f32.mrf.mxu0 }
  0xaf   : > { %v353_v13 = vpop.f32.mrf.mxu1  ;;  %v322_v21 = vadd.f32 %v321_v12, %v282_v14 }
  0xb0   : > { %v354_v25 = vadd.f32 %v353_v13, %v282_v14 }
  0xb1   : > { %v330_v30 = vmax.f32 %v322_v21, 0.0 }
  0xb2   : > { %v362_v32 = vmax.f32 %v354_v25, 0.0 }
  0xb4   : > { %v327_v15 = vpop.f32.mrf.mxu2 }
  0xb5   : > { %v328_v16 = vadd.f32 %v327_v15, %v292_v11  ;;  %v359_v17 = vpop.f32.mrf.mxu3 }
  0xb6   : > { %v360_v19 = vadd.f32 %v359_v17, %v292_v11  ;;  %v324_v20 = vpop.f32.mrf.mxu0 }
  0xb7   : > { %v332_v22 = vmax.f32 %v328_v16, 0.0  ;;  %v325_v23 = vadd.f32 %v324_v20, %v287_v18  ;;  %v356_v24 = vpop.f32.mrf.mxu1 }
  0xb8   : > { %v364_v26 = vmax.f32 %v360_v19, 0.0  ;;  %v357_v27 = vadd.f32 %v356_v24, %v287_v18 }
  0xb9   : > { %v331_v28 = vmax.f32 %v325_v23, 0.0  ;;  %521 = vmatpush.msk.msrb.mxu3 %vm371_vm1, %v332_v22 }
  0xba   : > { %v363_v29 = vmax.f32 %v357_v27, 0.0  ;;  %519 = vmatpush.msk.msrb.mxu2 %vm371_vm1, %v364_v26 }
  0xbb   : > { %415 = vmatpush.msrb.mxu3 %v331_v28 }
  0xbc   : > { %389 = vmatpush.msrb.mxu2 %v363_v29 }
  0xbd   : > { %416 = vmatpush.msrb.mxu3 %v330_v30 }
  0xbe   : > { %390 = vmatpush.msrb.mxu2 %v362_v32  ;;  %522 = vmatmul.msk.f32.vlgmr.msrb.gmra.mxu3 %vm367_vm2, %v365_v31 }
  0xbf   : > { %520 = vmatmul.msk.f32.vlgmr.msrb.gmra.mxu2 %vm367_vm2, %v366_v33 }
 0x141   : > { %v418_v34 = vpop.f32.mrf.mxu3 }
 0x142   : > { %v392_v35 = vpop.f32.mrf.mxu2 }
 0x143   : > { %v419_v37 = vadd.f32 %v418_v34, %v392_v35 }
 0x145   : > { %v423_v38 = vadd.f32 %v422_v36, %v419_v37 }
 0x147   : > { %424 = vst [vmem:[%s270_s13] sm:$0x1] %v423_v38 }
 0x148   : > { %638 = shalt.err (!%p635_p4)
}
 0x149   : > { %531 = dma.vmem_to_hbm [thread:$0]  (%p770_p10), %s437_s14, 16, %s439_s8, %s426_s15  }
 0x14a PF: > { %p542_p5 = scmp.ge.s32.totalorder %s677_s26, 2  ;;  %s450_s19 = sand.u32 1, %s665_s23  }
 0x14b   : > { %s451_s18 = scalar_lea.sflag [#allocation5], %s450_s19 }
 0x14c   : > { %p538_p7 = pnand %p542_p5, %p774_p11 }
 0x14e   : > { %p539_p8 = pneg %p538_p7 }
 0x150   : > { %660 = dma.done.wait (%p539_p8), %s451_s18, 16  }
 0x151   : > { %662 = vsyncadd (%p539_p8), %s451_s18, 4294967280  ;;  %p20_p9 = scmp.ge.s32.totalorder %s746_s28, 5   ;;  %s887_s23 = smov %s669_s24 }
 0x152   : > { %s888_s24 = smov %s673_s25  ;;  %s889_s25 = smov %s758_s7 }
 0x153   : > { %s890_s26 = smov %s746_s28  ;;  %22 = sbr.rel (!%p20_p9) target bundleno = 7 (0x7), region = 90 }
 0x158   :  { %456 = vsyncpa [#allocation4], 1 }
 0x159   :  { %458 = vsyncpa [#allocation4 + $0x1], 1 }
 0x15a   :  { %459 = vsyncpa [#allocation5], 1 }
 0x15b   :  { %461 = vsyncpa [#allocation5 + $0x1], 1 }

</bundles_post_ra>
